<compile_context>
chip_gen: v6e
topology: v6e:2x2x1
jax: 0.10.0
libtpu: 0.0.40
codegen_flags: <defaults>
</compile_context>

<pallas_src>
import functools

import jax
import jax.numpy as jnp
from jax import lax
from jax.experimental import pallas as pl
from jax.experimental.pallas import tpu as pltpu

SIGMA = 1.4
LANES = 128
_NEG_INV_TWO_SIGMA_SQ = -1.0 / (2.0 * SIGMA * SIGMA)


def _round_up(a, b):
    return -(-a // b) * b


def _corloss_kernel(scalars_ref, x_ref, t_ref, o_ref, acc_ref, *,
                    total_rows, block_rows, mask_tail):
    i = pl.program_id(0)
    last = pl.num_programs(0) - 1

    @pl.when(i == 0)
    def _init():
        acc_ref[...] = jnp.zeros_like(acc_ref)

    x = x_ref[...].astype(jnp.float32)
    t = t_ref[...].astype(jnp.float32)
    d = x - t
    # Accumulate exp(z) (exp rides the EUP slot); the "1 -" and lane-pad
    # correction are folded into the finalize-time bias scalar.
    val = jnp.exp(d * d * _NEG_INV_TWO_SIGMA_SQ)

    def _accum(v):
        # Vreg-tree reduce down to a single (8, LANES) vreg, then one add
        # into the single-vreg VMEM accumulator.
        acc_ref[...] += v.reshape(block_rows // 8, 8, LANES).sum(axis=0)

    if mask_tail:
        # Phase-gate the ragged-tail mask: only the last grid step pays the
        # iota/compare/select; steady-state blocks do the unmasked add.
        @pl.when(i < last)
        def _steady():
            _accum(val)

        @pl.when(i == last)
        def _tail():
            row_ids = i * block_rows + lax.broadcasted_iota(
                jnp.int32, (block_rows, LANES), 0)
            # Select (not multiply) so NaN/Inf garbage in the partial block
            # cannot leak into the sum.
            _accum(jnp.where(row_ids < total_rows, val, 0.0))
    else:
        _accum(val)

    @pl.when(i == last)
    def _finalize():
        inv_n = scalars_ref[0, 0]
        bias = scalars_ref[0, 1]          # (n + lane_pad) / n
        # Single cross-lane/sublane reduce for the whole kernel.
        o_ref[0, 0] = bias - jnp.sum(acc_ref[...]) * inv_n


def _generation_params():
    """(bytes per operand per grid step, vmem_limit_bytes) per TPU generation."""
    try:
        kind = jax.devices()[0].device_kind.lower()
    except Exception:  # pragma: no cover - defensive
        kind = ""
    if "v5 lite" in kind or "v5e" in kind or "v5lite" in kind:
        # v5e: 16 MiB default scoped VMEM (128 MiB physical) -> 2 MiB tiles
        # (8 MiB double-buffered pipeline buffers); raise the scoped limit
        # for headroom.
        return 2 << 20, 32 << 20
    if "v7" in kind:
        # v7x: 64 MiB physical VMEM -> 4 MiB tiles (16 MiB pipeline buffers),
        # scoped limit raised but with headroom left in physical VMEM.
        return 4 << 20, 40 << 20
    # v6e (and other 128 MiB-VMEM chips / unknown): 4 MiB tiles.
    return 4 << 20, 48 << 20


def cor_loss(inp, tgt, *, block_rows_override=None):
    assert inp.shape == tgt.shape, (inp.shape, tgt.shape)
    n = inp.size

    # ravel is a free bitcast for contiguous arrays; keep native dtype.
    flat_x = jnp.ravel(inp)
    flat_t = jnp.ravel(tgt)

    # Pad (< 128 elements) only if n is not lane aligned.  Identical zero
    # padding on both operands contributes exp(0)=1 per padded lane, which is
    # corrected by the finalize bias.
    lane_pad = (-n) % LANES
    if lane_pad:
        flat_x = jnp.pad(flat_x, (0, lane_pad))
        flat_t = jnp.pad(flat_t, (0, lane_pad))

    rows = (n + lane_pad) // LANES
    x2d = flat_x.reshape(rows, LANES)
    t2d = flat_t.reshape(rows, LANES)

    itemsize_max = max(jnp.dtype(inp.dtype).itemsize,
                       jnp.dtype(tgt.dtype).itemsize)
    itemsize_min = min(jnp.dtype(inp.dtype).itemsize,
                       jnp.dtype(tgt.dtype).itemsize)
    # Sublane-tiling alignment (8 for f32, 16 for bf16/f16, 32 for 1-byte);
    # always a multiple of 8, which the in-kernel vreg reshape requires.
    row_align = max(8, 32 // itemsize_min)

    tile_bytes, vmem_limit = _generation_params()
    max_block_rows = (tile_bytes // (LANES * itemsize_max)) // row_align * row_align
    max_block_rows = max(max_block_rows, row_align)

    if block_rows_override is not None:
        block_rows = _round_up(int(block_rows_override), row_align)
    elif rows <= max_block_rows:
        # Single block covering the whole slab (rounded up to the tiling
        # alignment; the overhang is handled by the in-kernel tail mask).
        block_rows = _round_up(rows, row_align)
    else:
        block_rows = max_block_rows

    num_blocks = int(pl.cdiv(rows, block_rows))
    mask_tail = (rows % block_rows) != 0

    kernel = functools.partial(
        _corloss_kernel,
        total_rows=rows, block_rows=block_rows, mask_tail=mask_tail)

    # scalars = [1/n, (n + lane_pad)/n]  (SMEM operand)
    scalars = jnp.array([[1.0 / float(n), (n + lane_pad) / float(n)]],
                        dtype=jnp.float32)

    cost = pl.CostEstimate(
        flops=4 * n,
        transcendentals=n,
        bytes_accessed=n * (jnp.dtype(inp.dtype).itemsize
                            + jnp.dtype(tgt.dtype).itemsize) + 4)

    out = pl.pallas_call(
        kernel,
        out_shape=jax.ShapeDtypeStruct((1, 1), jnp.float32),
        grid_spec=pltpu.PrefetchScalarGridSpec(
            num_scalar_prefetch=0,
            grid=(num_blocks,),
            in_specs=[
                pl.BlockSpec((1, 2), lambda i: (0, 0),
                             memory_space=pltpu.SMEM),                # scalars
                pl.BlockSpec((block_rows, LANES), lambda i: (i, 0)),  # input
                pl.BlockSpec((block_rows, LANES), lambda i: (i, 0)),  # target
            ],
            out_specs=pl.BlockSpec((1, 1), lambda i: (0, 0),
                                   memory_space=pltpu.SMEM),
            scratch_shapes=[pltpu.VMEM((8, LANES), jnp.float32)],     # 1 vreg
        ),
        compiler_params=pltpu.CompilerParams(
            dimension_semantics=("arbitrary",),   # running accumulator
            vmem_limit_bytes=vmem_limit),
        cost_estimate=cost,
    )(scalars, x2d, t2d)
    return out[0, 0]


def cor_loss_ref(inp, tgt):
    d = inp.astype(jnp.float32) - tgt.astype(jnp.float32)
    ret = 1.0 - jnp.exp(-(d ** 2) / (2.0 * SIGMA * SIGMA))
    return jnp.mean(ret)


if __name__ == "__main__":
    key = jax.random.PRNGKey(0)
    k1, k2, k3, k4, k5, k6 = jax.random.split(key, 6)

    # 1) Primary small NCHW test (matches the module's typical 4-D input);
    #    single lane-aligned block, default generation-aware tiling.
    shape = (2, 4, 16, 16)
    x = jax.random.normal(k1, shape, dtype=jnp.float32)
    t = jax.random.normal(k2, shape, dtype=jnp.float32)
    out = jax.block_until_ready(cor_loss(x, t))
    ref = jax.block_until_ready(cor_loss_ref(x, t))
    assert jnp.allclose(out, ref, rtol=1e-4, atol=1e-5), (out, ref)

    # 2) Multi-block path with a ragged row tail (phase-gated mask +
    #    accumulator carry across grid steps), forced via a small block size:
    #    160000 elems -> rows=1250, block_rows=128 -> 10 steps, masked tail.
    shape2 = (2, 8, 100, 100)
    x2 = jax.random.normal(k3, shape2, dtype=jnp.float32)
    t2 = jax.random.normal(k4, shape2, dtype=jnp.float32)
    out2 = jax.block_until_ready(cor_loss(x2, t2, block_rows_override=128))
    ref2 = jax.block_until_ready(cor_loss_ref(x2, t2))
    assert jnp.allclose(out2, ref2, rtol=1e-4, atol=1e-5), (out2, ref2)

    # 3) Non-lane-aligned element count (exercises the lane-pad / finalize
    #    bias correction of the exp-accumulation rewrite): 1155 elements.
    shape3 = (3, 5, 7, 11)
    x3 = jax.random.normal(k5, shape3, dtype=jnp.float32)
    t3 = jax.random.normal(k6, shape3, dtype=jnp.float32)
    out3 = jax.block_until_ready(cor_loss(x3, t3))
    ref3 = jax.block_until_ready(cor_loss_ref(x3, t3))
    assert jnp.allclose(out3, ref3, rtol=1e-4, atol=1e-5), (out3, ref3)

    print("KERNEL_OK")
</pallas_src>

<mosaic_0001>
module attributes {stable_mosaic.version = 11 : i64} {
  func.func @_corloss_kernel(%arg0: i32, %arg1: memref<1x2xf32, #tpu.memory_space<smem>>, %arg2: memref<16x128xf32, #tpu.memory_space<vmem>>, %arg3: memref<16x128xf32, #tpu.memory_space<vmem>>, %arg4: memref<1x1xf32, #tpu.memory_space<smem>>, %arg5: memref<8x128xf32, #tpu.memory_space<vmem>>) attributes {dimension_semantics = [#tpu.dimension_semantics<arbitrary>], iteration_bounds = array<i64: 1>, scalar_prefetch = 0 : i64, scratch_operands = 1 : i64, tpu.core_type = #tpu.core_type<tc>, window_params = [{transform_indices = @transform_0, window_bounds = array<i64: 1, 2>}, {transform_indices = @transform_1, window_bounds = array<i64: 16, 128>}, {transform_indices = @transform_2, window_bounds = array<i64: 16, 128>}, {transform_indices = @transform_3, window_bounds = array<i64: 1, 1>}]} {
    %c0_i32 = arith.constant 0 : i32
    %0 = arith.cmpi eq, %arg0, %c0_i32 : i32
    %1 = arith.extui %0 : i1 to i32
    %c0_i32_0 = arith.constant 0 : i32
    %2 = arith.cmpi ne, %1, %c0_i32_0 : i32
    scf.if %2 {
      %cst_11 = arith.constant 0.000000e+00 : f32
      %18 = vector.broadcast %cst_11 : f32 to vector<8x128xf32>
      %c0_12 = arith.constant 0 : index
      %c0_13 = arith.constant 0 : index
      %19 = vector.load %arg5[%c0_12, %c0_13] : memref<8x128xf32, #tpu.memory_space<vmem>>, vector<8x128xf32>
      tpu.vector_store %arg5[%c0_12, %c0_13], %18 {strides = array<i32>} : memref<8x128xf32, #tpu.memory_space<vmem>>, vector<8x128xf32>,
    } else {
    }
    %c0 = arith.constant 0 : index
    %c0_1 = arith.constant 0 : index
    %3 = vector.load %arg2[%c0, %c0_1] : memref<16x128xf32, #tpu.memory_space<vmem>>, vector<16x128xf32>
    %c0_2 = arith.constant 0 : index
    %c0_3 = arith.constant 0 : index
    %4 = vector.load %arg3[%c0_2, %c0_3] : memref<16x128xf32, #tpu.memory_space<vmem>>, vector<16x128xf32>
    %5 = arith.subf %3, %4 : vector<16x128xf32>
    %6 = arith.mulf %5, %5 : vector<16x128xf32>
    %cst = arith.constant -0.255102038 : f32
    %7 = vector.broadcast %cst : f32 to vector<16x128xf32>
    %8 = arith.mulf %6, %7 : vector<16x128xf32>
    %9 = math.exp %8 : vector<16x128xf32>
    %c0_4 = arith.constant 0 : index
    %c0_5 = arith.constant 0 : index
    %10 = vector.load %arg5[%c0_4, %c0_5] : memref<8x128xf32, #tpu.memory_space<vmem>>, vector<8x128xf32>
    %11 = vector.shape_cast %9 : vector<16x128xf32> to vector<2x8x128xf32>
    %cst_6 = arith.constant dense<0.000000e+00> : vector<8x128xf32>
    %12 = vector.multi_reduction <add>, %11, %cst_6 [0] : vector<2x8x128xf32> to vector<8x128xf32>
    %13 = arith.addf %10, %12 : vector<8x128xf32>
    %c0_7 = arith.constant 0 : index
    %c0_8 = arith.constant 0 : index
    %14 = vector.load %arg5[%c0_7, %c0_8] : memref<8x128xf32, #tpu.memory_space<vmem>>, vector<8x128xf32>
    tpu.vector_store %arg5[%c0_7, %c0_8], %13 {strides = array<i32>} : memref<8x128xf32, #tpu.memory_space<vmem>>, vector<8x128xf32>,
    %c0_i32_9 = arith.constant 0 : i32
    %15 = arith.cmpi eq, %arg0, %c0_i32_9 : i32
    %16 = arith.extui %15 : i1 to i32
    %c0_i32_10 = arith.constant 0 : i32
    %17 = arith.cmpi ne, %16, %c0_i32_10 : i32
    scf.if %17 {
      %c0_11 = arith.constant 0 : index
      %c0_12 = arith.constant 0 : index
      %18 = memref.load %arg1[%c0_11, %c0_12] : memref<1x2xf32, #tpu.memory_space<smem>>
      %c0_13 = arith.constant 0 : index
      %c1 = arith.constant 1 : index
      %19 = memref.load %arg1[%c0_13, %c1] : memref<1x2xf32, #tpu.memory_space<smem>>
      %c0_14 = arith.constant 0 : index
      %c0_15 = arith.constant 0 : index
      %20 = vector.load %arg5[%c0_14, %c0_15] : memref<8x128xf32, #tpu.memory_space<vmem>>, vector<8x128xf32>
      %21 = vector.shape_cast %20 : vector<8x128xf32> to vector<1x8x128xf32>
      %cst_16 = arith.constant dense<0.000000e+00> : vector<1xf32>
      %22 = vector.multi_reduction <add>, %21, %cst_16 [1, 2] : vector<1x8x128xf32> to vector<1xf32>
      %23 = vector.shape_cast %22 : vector<1xf32> to vector<1x1x1xf32>
      %24 = vector.extract %23[0, 0, 0] : f32 from vector<1x1x1xf32>
      %25 = arith.mulf %24, %18 : f32
      %26 = arith.subf %19, %25 : f32
      %c0_17 = arith.constant 0 : index
      %c0_18 = arith.constant 0 : index
      %27 = memref.load %arg4[%c0_17, %c0_18] : memref<1x1xf32, #tpu.memory_space<smem>>
      memref.store %26, %arg4[%c0_17, %c0_18] : memref<1x1xf32, #tpu.memory_space<smem>>
    } else {
    }
    return
  }
  func.func @transform_0(%arg0: i32) -> (i32, i32) {
    %c0_i32 = arith.constant 0 : i32
    %c0_i32_0 = arith.constant 0 : i32
    %c0_i32_1 = arith.constant 0 : i32
    return %c0_i32, %c0_i32_0 : i32, i32
  }
  func.func @transform_1(%arg0: i32) -> (i32, i32) {
    %c0_i32 = arith.constant 0 : i32
    %c0_i32_0 = arith.constant 0 : i32
    return %arg0, %c0_i32 : i32, i32
  }
  func.func @transform_2(%arg0: i32) -> (i32, i32) {
    %c0_i32 = arith.constant 0 : i32
    %c0_i32_0 = arith.constant 0 : i32
    return %arg0, %c0_i32 : i32, i32
  }
  func.func @transform_3(%arg0: i32) -> (i32, i32) {
    %c0_i32 = arith.constant 0 : i32
    %c0_i32_0 = arith.constant 0 : i32
    %c0_i32_1 = arith.constant 0 : i32
    return %c0_i32, %c0_i32_0 : i32, i32
  }
}

</mosaic_0001>

<bundles_post_ra>
// kernel: tpu_custom_call.1
= control target key start
LH: loop header
LB: loop body
LE: loop exit
PB: predicated region body
PF: predicated region fallthrough
CT: control target
= control target key end

     0   :  { %8 = vsyncpa [#allocation5], 0  ;;  %s227_s0 = inlined_call_operand.hbm [shape: f32[1,2], index: 0, kind: input, shape index: {}]   ;;  %s228_s1 = inlined_call_operand.hbm [shape: f32[16,128], index: 1, kind: input, shape index: {}]   ;;  %s229_s2 = inlined_call_operand.hbm [shape: f32[16,128], index: 2, kind: input, shape index: {}]   ;;  %s230_s3 = inlined_call_operand.hbm [shape: f32[1,1], index: 3, kind: output, shape index: {}]  }
   0x1   :  { %9 = vsyncpa [#allocation4], 0 }
   0x2   :  { %10 = vsyncpa [#allocation9], 0 }
   0x3   :  { %11 = vsyncpa [#allocation6], 0  ;;  %s189_s12 = smov [#allocation3]   ;;  %s190_s15 = smov [#allocation7]  }
   0x4   :  { %19 = dma.hbm_to_smem %s227_s0, 16, %s189_s12, [#allocation5]  }
   0x5   :  { %s25_s16 = sshll.u32 %s190_s15, 4  ;;  %s26_s16 = int_to_ptr.vmem [resolvable:$true] %s25_s16 }
   0x6   :  { %s141_s17 = scalar_lea.vmem %s26_s16, 256  ;;  %p146_p1 = scmp.lt.s32.totalorder %s26_s16, %s26_s16 }
   0x7   :  { %p142_p0 = scmp.ne.s32.totalorder %s26_s16, %s141_s17  ;;  %p147_p2 = scmp.lt.s32.totalorder %s141_s17, %s141_s17 }
   0x9   :  { %p148_p3 = por %p147_p2, %p146_p1 }
   0xb   :  { %p149_p4 = pnand %p148_p3, %p142_p0 }
   0xd   :  { %152 = shalt.err (!%p149_p4)
}
   0xe   :  { %s191_s18 = smov 128   ;;  %s192_s19 = smov 8  }
   0xf   :  { %31 = dma.hbm_to_vmem [thread:$0]  %s228_s1, 256, %s26_s16, [#allocation4], %s191_s18, %s191_s18, %s192_s19  }
  0x10   :  { %s193_s22 = smov [#allocation8]  }
  0x11   :  { %s37_s23 = sshll.u32 %s193_s22, 4  ;;  %s38_s23 = int_to_ptr.vmem [resolvable:$true] %s37_s23 }
  0x12   :  { %s161_s0 = scalar_lea.vmem %s38_s23, 256  ;;  %p166_p6 = scmp.lt.s32.totalorder %s38_s23, %s38_s23 }
  0x13   :  { %p162_p5 = scmp.ne.s32.totalorder %s38_s23, %s161_s0  ;;  %p167_p7 = scmp.lt.s32.totalorder %s161_s0, %s161_s0 }
  0x15   :  { %p168_p8 = por %p167_p7, %p166_p6 }
  0x17   :  { %p169_p9 = pnand %p168_p8, %p162_p5 }
  0x19   :  { %172 = shalt.err (!%p169_p9)
}
  0x1a   :  { %43 = dma.hbm_to_vmem [thread:$0]  %s229_s2, 256, %s38_s23, [#allocation9], %s191_s18, %s191_s18, %s192_s19  }
  0x1b   :  { %181 = dma.done.wait [#allocation5], 16  }
  0x1c   :  { %182 = vsyncadd [#allocation5], 4294967280 }
  0x1d   :  { %183 = dma.done.wait [#allocation4], 256  }
  0x1e   :  { %184 = vsyncadd [#allocation4], 4294967040 }
  0x1f   :  { %185 = dma.done.wait [#allocation9], 256  }
  0x20   :  { %186 = vsyncadd [#allocation9], 4294967040 }
  0x21   :  { %53 = sfence }
  0x22   :  { %v59_v0 = vld [vmem:[#allocation7] sm:$0xff]  ;;  %v60_v1 = vld [vmem:[#allocation7 + $0x8] sm:$0xff]  ;;  %v61_v2 = vld [vmem:[#allocation8] sm:$0xff]  ;;  %s80_s1 = sld [smem:[#allocation3]]  ;;  %s194_s29 = smov [#allocation10]  }
  0x23   :  { %v62_v3 = vld [vmem:[#allocation8 + $0x8] sm:$0xff]  ;;  %v63_v4 = vsub.f32 %v59_v0, %v61_v2  ;;  %s112_s2 = sld [smem:[#allocation3 + $0x1]] }
  0x24   :  { %v64_v5 = vsub.f32 %v60_v1, %v62_v3 }
  0x25   :  { %v65_v6 = vmul.f32 %v63_v4, %v63_v4 }
  0x26   :  { %v66_v7 = vmul.f32 %v64_v5, %v64_v5 }
  0x27   :  { %v67_v8 = vmul.f32 -0.25510204, %v65_v6 }
  0x28   :  { %v68_v9 = vmul.f32 -0.25510204, %v66_v7 }
  0x29   :  { %v69_v10 = vmul.f32 1.442695, %v67_v8 }
  0x2a   :  { %v71_v11 = vmul.f32 1.442695, %v68_v9 }
  0x2b   :  { %121 = vpow2.f32 %v69_v10 }
  0x2c   :  { %123 = vpow2.f32 %v71_v11 }
  0x38   :  { %v122_v12 = vpop.eup %121 }
  0x39   :  { %v124_v13 = vpop.eup %123 }
  0x3a   :  { %v74_v14 = vadd.f32 %v124_v13, %v122_v12 }
  0x3c   :  { %83 = vadd.xlane.f32.xlu0 %v74_v14 }
  0xc5   :  { %v84_v15 = vpop.xlane.xlu0 %83 }
  0xc6   :  { %v85_v16 = vrot.slane %v84_v15, 4 }
  0xc8   :  { %v86_v17 = vadd.f32 %v85_v16, %v84_v15 }
  0xca   :  { %v87_v18 = vrot.slane %v86_v17, 2 }
  0xcc   :  { %v88_v19 = vadd.f32 %v87_v18, %v86_v17 }
  0xce   :  { %v89_v20 = vrot.slane %v88_v19, 1 }
  0xd0   :  { %v90_v21 = vadd.f32 %v89_v20, %v88_v19 }
  0xd2   :  { %113 = vpush %v90_v21 }
 0x103   :  { %s114_s26 = spop %113 }
 0x104   :  { %s92_s27 = smul.f32 %s114_s26, %s80_s1 }
 0x106   :  { %s93_s28 = ssub.f32 %s112_s2, %s92_s27 }
 0x108   :  { %95 = sst [smem:[#allocation10]] %s93_s28 }
 0x109   :  { %103 = dma.smem_to_hbm %s194_s29, 16, %s230_s3, [#allocation6]  }
 0x10a   :  { %187 = dma.done.wait [#allocation6], 16  }
 0x10b   :  { %188 = vsyncadd [#allocation6], 4294967280 }
 0x10c   :  { %107 = sfence }
 0x10d   :  { %108 = vsyncpa [#allocation4], 1 }
 0x10e   :  { %109 = vsyncpa [#allocation9], 1 }
 0x10f   :  { %110 = vsyncpa [#allocation5], 1 }
 0x110   :  { %111 = vsyncpa [#allocation6], 1 }

</bundles_post_ra>
